<compile_context>
chip_gen: v6e
topology: v6e:2x2x1
jax: 0.10.0
libtpu: 0.0.40
codegen_flags: <defaults>
</compile_context>

<pallas_src>
import functools

import jax
import jax.numpy as jnp
from jax import lax
from jax.experimental import pallas as pl
from jax.experimental.pallas import tpu as pltpu


def _pool_conv_kernel(x_ref, wbd_ref, o_ref, *, H, W):
    # x_ref  : (N*C, H*W)      VMEM  batch*channels on sublanes, flat spatial on lanes
    # wbd_ref: (N*outC, N*C)   VMEM  block-diagonal 1x1 conv weight (bias-free)
    # o_ref  : (N*outC, P)     VMEM  P = (H//2)*(W//2)
    HW = H * W
    Hh, Wh = H // 2, W // 2
    P = Hh * Wh

    x = x_ref[...].astype(jnp.float32)                                  # (NC, HW)

    # ---- MaxPool2d(2, 2) --------------------------------------------------
    # Lane r = h*W + w.  Bring the right / below / diagonal neighbours onto lane r
    # with two circular lane rotations (XLU — MXU and VPU stay free) and take
    # elementwise maxes.  Circular wrap-around only touches lanes that are never
    # selected by the compaction below, so pooling semantics are exact.
    y = jnp.maximum(x, pltpu.roll(x, HW - 1, 1))     # max(x[r], x[r+1])
    z = jnp.maximum(y, pltpu.roll(y, HW - W, 1))     # max over the full 2x2 window at r

    # Compact lanes r = 2i*W + 2j  ->  p = i*Wh + j with an exact 0/1 selection matmul
    # (one 1 per output column).  The selection matrix is built in-register from iotas,
    # so no constant table is DMA'd from HBM.
    r_ids = lax.broadcasted_iota(jnp.int32, (HW, P), 0)
    p_ids = lax.broadcasted_iota(jnp.int32, (HW, P), 1)
    if (Wh & (Wh - 1)) == 0:      # power-of-two: shift/and always lower cleanly
        i_idx = jnp.right_shift(p_ids, Wh.bit_length() - 1)
        j_idx = jnp.bitwise_and(p_ids, Wh - 1)
    else:                          # general fallback
        i_idx = p_ids // Wh
        j_idx = p_ids % Wh
    want = 2 * W * i_idx + 2 * j_idx
    sel = (r_ids == want).astype(jnp.float32)                            # (HW, P)
    pooled = jnp.dot(z, sel, preferred_element_type=jnp.float32)         # (NC, P)

    # ---- 1x1 conv: block-diagonal channel mix, all batches in one matmul ---
    out = jnp.dot(wbd_ref[...].astype(jnp.float32), pooled,
                  preferred_element_type=jnp.float32)                    # (N*outC, P)
    o_ref[...] = out.astype(o_ref.dtype)


def conv2d_transition_block(x, w_pw):
    """Forward of Conv2d_TransistionBlock: MaxPool2d(2,2) -> Conv2d(inC,outC,1,bias=False).

    x: (N, C, H, W) NCHW; w_pw: (outC, C, 1, 1). Returns (N, outC, H//2, W//2).
    """
    N, C, H, W = x.shape
    outC = w_pw.shape[0]
    Hh, Wh = H // 2, W // 2
    He, We = 2 * Hh, 2 * Wh
    if (He, We) != (H, W):         # PyTorch MaxPool2d(2,2) floors odd spatial dims
        x = x[:, :, :He, :We]
    P = Hh * Wh

    # Free, contiguous reshapes only (no HBM transpose passes).
    x2 = x.reshape(N * C, He * We)                                  # batch folded on sublanes
    w2 = w_pw.reshape(outC, C).astype(x.dtype)
    w_bd = jnp.kron(jnp.eye(N, dtype=w2.dtype), w2)                 # (N*outC, N*C) block-diag

    out = pl.pallas_call(
        functools.partial(_pool_conv_kernel, H=He, W=We),
        out_shape=jax.ShapeDtypeStruct((N * outC, P), x.dtype),
        # No grid / BlockSpecs: single invocation, whole (tiny) operands live in VMEM.
    )(x2, w_bd)

    return out.reshape(N, outC, Hh, Wh)


def _reference(x, w_pw):
    # Pure-JAX reference matching nn.MaxPool2d(2,2) + nn.Conv2d(1x1, bias=False).
    N, C, H, W = x.shape
    Hh, Wh = H // 2, W // 2
    pooled = x[:, :, :2 * Hh, :2 * Wh].reshape(N, C, Hh, 2, Wh, 2).max(axis=(3, 5))
    return jnp.einsum("oc,nchw->nohw", w_pw.reshape(w_pw.shape[0], C), pooled,
                      precision=jax.lax.Precision.HIGHEST)


if __name__ == "__main__":
    # Module config: Conv2d_TransistionBlock(inC=4, outC=8)
    inC, outC = 4, 8
    N, H, W = 2, 16, 16

    key = jax.random.PRNGKey(0)
    k1, k2 = jax.random.split(key)
    x = jax.random.normal(k1, (N, inC, H, W), dtype=jnp.float32)
    w_pw = jax.random.normal(k2, (outC, inC, 1, 1), dtype=jnp.float32) * 0.1

    out = jax.block_until_ready(conv2d_transition_block(x, w_pw))

    ref = _reference(x, w_pw)
    assert out.shape == ref.shape == (N, outC, H // 2, W // 2)
    assert jnp.allclose(out, ref, atol=1e-5, rtol=1e-5), "mismatch vs reference"

    print("KERNEL_OK")
</pallas_src>

<mosaic_0001>
module attributes {stable_mosaic.version = 11 : i64} {
  func.func @_pool_conv_kernel(%arg0: memref<8x256xf32, #tpu.memory_space<vmem>>, %arg1: memref<16x8xf32, #tpu.memory_space<vmem>>, %arg2: memref<16x64xf32, #tpu.memory_space<vmem>>) attributes {dimension_semantics = [], scalar_prefetch = 0 : i64, scratch_operands = 0 : i64, tpu.core_type = #tpu.core_type<tc>} {
    %c0 = arith.constant 0 : index
    %c0_0 = arith.constant 0 : index
    %0 = vector.load %arg0[%c0, %c0_0] : memref<8x256xf32, #tpu.memory_space<vmem>>, vector<8x256xf32>
    %c255_i32 = arith.constant 255 : i32
    %1 = tpu.dynamic_rotate %0 by %c255_i32 dim 1 : vector<8x256xf32>, i32 -> vector<8x256xf32>
    %2 = arith.maximumf %0, %1 : vector<8x256xf32>
    %c240_i32 = arith.constant 240 : i32
    %3 = tpu.dynamic_rotate %2 by %c240_i32 dim 1 : vector<8x256xf32>, i32 -> vector<8x256xf32>
    %4 = arith.maximumf %2, %3 : vector<8x256xf32>
    %5 = tpu.iota {dimensions = array<i32: 0>} : vector<256x64xi32>
    %6 = tpu.iota {dimensions = array<i32: 1>} : vector<256x64xi32>
    %c3_i32 = arith.constant 3 : i32
    %7 = vector.broadcast %c3_i32 : i32 to vector<256x64xi32>
    %8 = arith.shrsi %6, %7 : vector<256x64xi32>
    %c7_i32 = arith.constant 7 : i32
    %9 = vector.broadcast %c7_i32 : i32 to vector<256x64xi32>
    %10 = arith.andi %6, %9 : vector<256x64xi32>
    %c32_i32 = arith.constant 32 : i32
    %11 = vector.broadcast %c32_i32 : i32 to vector<256x64xi32>
    %12 = arith.muli %11, %8 : vector<256x64xi32>
    %c2_i32 = arith.constant 2 : i32
    %13 = vector.broadcast %c2_i32 : i32 to vector<256x64xi32>
    %14 = arith.muli %13, %10 : vector<256x64xi32>
    %15 = arith.addi %12, %14 : vector<256x64xi32>
    %16 = arith.cmpi eq, %5, %15 : vector<256x64xi32>
    %17 = arith.extui %16 : vector<256x64xi1> to vector<256x64xi32>
    %18 = arith.sitofp %17 : vector<256x64xi32> to vector<256x64xf32>
    %cst = arith.constant dense<0.000000e+00> : vector<8x64xf32>
    %19 = tpu.matmul %4, %18, %cst {dimension_numbers = #tpu.dot_dimension_numbers<[1], [0], [0], [1], [0, 0, 1, 1], [], []>} : vector<8x256xf32>, vector<256x64xf32>, vector<8x64xf32> -> vector<8x64xf32>
    %c0_1 = arith.constant 0 : index
    %c0_2 = arith.constant 0 : index
    %20 = vector.load %arg1[%c0_1, %c0_2] : memref<16x8xf32, #tpu.memory_space<vmem>>, vector<16x8xf32>
    %cst_3 = arith.constant dense<0.000000e+00> : vector<16x64xf32>
    %21 = tpu.matmul %20, %19, %cst_3 {dimension_numbers = #tpu.dot_dimension_numbers<[1], [0], [0], [1], [0, 0, 1, 1], [], []>} : vector<16x8xf32>, vector<8x64xf32>, vector<16x64xf32> -> vector<16x64xf32>
    %c0_4 = arith.constant 0 : index
    %c0_5 = arith.constant 0 : index
    %22 = vector.load %arg2[%c0_4, %c0_5] : memref<16x64xf32, #tpu.memory_space<vmem>>, vector<16x64xf32>
    tpu.vector_store %arg2[%c0_4, %c0_5], %21 {strides = array<i32>} : memref<16x64xf32, #tpu.memory_space<vmem>>, vector<16x64xf32>,
    return
  }
}

</mosaic_0001>

<bundles_post_ra>
// kernel: tpu_custom_call.1
= control target key start
LH: loop header
LB: loop body
LE: loop exit
PB: predicated region body
PF: predicated region fallthrough
CT: control target
= control target key end

     0   :  { %v18_v2 = vlaneseq  ;;  %s638_s0 = inlined_call_operand.vmem [shape: f32[8,256], index: 0, kind: input, shape index: {}]   ;;  %s639_s1 = inlined_call_operand.vmem [shape: f32[16,8], index: 1, kind: input, shape index: {}]   ;;  %s640_s2 = inlined_call_operand.hbm [shape: f32[16,64], index: 2, kind: output, shape index: {}]  }
   0x1   :  { %v512_v0 = vld [vmem:[%s638_s0] sm:$0xff]  ;;  %v517_v1 = vld [vmem:[%s638_s0 + $0x8] sm:$0xff] }
   0x2   :  { %v456_v3 = vpack.i.bf16 %v517_v1, %v512_v0 }
   0x3   :  { %7 = vsyncpa [#allocation3], 0  ;;  %v521_v4 = vand.u32 127, %v18_v2  ;;  %v523_v5 = vshrl.u32 %v18_v2, 7  ;;  %s488_s13 = smov 127   ;;  %v489_v18 = vmov 1.0  }
   0x4   :  { %457 = vrot.lane.b32.xlu0 %v456_v3, %s488_s13  ;;  %s490_s0 = smov 112   ;;  %v238_v58 = vld [vmem:[%s639_s1] sm:$0xff]  ;;  %v239_v62 = vld [vmem:[%s639_s1 + $0x8] sm:$0xff]  ;;  %s491_s18 = smov [#allocation2]  }
   0x5   :  { %v67_v6 = vshra.s32 %v521_v4, 3  ;;  %v68_v7 = vand.u32 7, %v521_v4  ;;  %v66_v8 = vadd.s32 248, %v523_v5  ;;  %v50_v11 = vadd.s32 120, %v523_v5  ;;  %s330_s19 = sshll.u32 %s491_s18, 4  ;;  %s331_s19 = int_to_ptr.vmem [resolvable:$true] %s330_s19 }
   0x6   :  { %v65_v12 = vadd.s32 240, %v523_v5  ;;  %v49_v13 = vadd.s32 112, %v523_v5  ;;  %v64_v15 = vadd.s32 232, %v523_v5  ;;  %v48_v16 = vadd.s32 104, %v523_v5  ;;  %s466_s20 = scalar_lea.vmem %s331_s19, 256  ;;  %p471_p1 = scmp.lt.s32.totalorder %s331_s19, %s331_s19 }
   0x7   :  { %v69_v9 = vmul.u32 32, %v67_v6  ;;  %v70_v10 = vmul.u32 2, %v68_v7  ;;  %v63_v17 = vadd.s32 224, %v523_v5  ;;  %v47_v19 = vadd.s32 96, %v523_v5  ;;  %p467_p0 = scmp.ne.s32.totalorder %s331_s19, %s466_s20  ;;  %p472_p2 = scmp.lt.s32.totalorder %s466_s20, %s466_s20 }
   0x8   :  { %v62_v20 = vadd.s32 216, %v523_v5  ;;  %v46_v21 = vadd.s32 88, %v523_v5  ;;  %v61_v22 = vadd.s32 208, %v523_v5  ;;  %v45_v23 = vadd.s32 80, %v523_v5 }
   0x9   :  { %v531_v14 = vadd.s32 %v70_v10, %v69_v9  ;;  %v60_v24 = vadd.s32 200, %v523_v5  ;;  %v44_v25 = vadd.s32 72, %v523_v5  ;;  %v59_v26 = vadd.s32 192, %v523_v5  ;;  %p473_p3 = por %p472_p2, %p471_p1 }
   0xa   :  { %v43_v27 = vadd.s32 64, %v523_v5  ;;  %v58_v28 = vadd.s32 184, %v523_v5  ;;  %v42_v29 = vadd.s32 56, %v523_v5  ;;  %v57_v30 = vadd.s32 176, %v523_v5 }
   0xb   :  { %vm103_vm0 = vcmp.eq.s32.totalorder %v66_v8, %v531_v14  ;;  %vm87_vm1 = vcmp.eq.s32.totalorder %v50_v11, %v531_v14  ;;  %vm102_vm2 = vcmp.eq.s32.totalorder %v65_v12, %v531_v14  ;;  %vm86_vm3 = vcmp.eq.s32.totalorder %v49_v13, %v531_v14  ;;  %p474_p4 = pnand %p473_p3, %p467_p0 }
   0xc   :  { %407 = vmatprep.subr.msk.mxu0 %vm103_vm0, %v489_v18  ;;  %vm101_vm4 = vcmp.eq.s32.totalorder %v64_v15, %v531_v14  ;;  %vm85_vm5 = vcmp.eq.s32.totalorder %v48_v16, %v531_v14  ;;  %vm100_vm6 = vcmp.eq.s32.totalorder %v63_v17, %v531_v14  ;;  %vm84_vm7 = vcmp.eq.s32.totalorder %v47_v19, %v531_v14 }
   0xd   :  { %408 = vmatpush3.msk.msra.mxu0 %vm87_vm1, %v489_v18  ;;  %vm99_vm8 = vcmp.eq.s32.totalorder %v62_v20, %v531_v14  ;;  %vm83_vm9 = vcmp.eq.s32.totalorder %v46_v21, %v531_v14  ;;  %vm98_vm10 = vcmp.eq.s32.totalorder %v61_v22, %v531_v14  ;;  %vm82_vm11 = vcmp.eq.s32.totalorder %v45_v23, %v531_v14 }
   0xe   :  { %409 = vmatprep.subr.msk.mxu0 %vm102_vm2, %v489_v18  ;;  %vm97_vm12 = vcmp.eq.s32.totalorder %v60_v24, %v531_v14  ;;  %vm81_vm13 = vcmp.eq.s32.totalorder %v44_v25, %v531_v14  ;;  %vm96_vm14 = vcmp.eq.s32.totalorder %v59_v26, %v531_v14  ;;  %vm80_vm15 = vcmp.eq.s32.totalorder %v43_v27, %v531_v14 }
   0xf   :  { %410 = vmatpush3.msk.msra.mxu0 %vm86_vm3, %v489_v18  ;;  %v41_v31 = vadd.s32 48, %v523_v5  ;;  %vm95_vm0 = vcmp.eq.s32.totalorder %v58_v28, %v531_v14  ;;  %v56_v32 = vadd.s32 168, %v523_v5  ;;  %vm79_vm1 = vcmp.eq.s32.totalorder %v42_v29, %v531_v14 }
  0x10   :  { %411 = vmatprep.subr.msk.mxu0 %vm101_vm4, %v489_v18  ;;  %v40_v33 = vadd.s32 40, %v523_v5  ;;  %vm94_vm2 = vcmp.eq.s32.totalorder %v57_v30, %v531_v14  ;;  %v55_v34 = vadd.s32 160, %v523_v5  ;;  %v39_v35 = vadd.s32 32, %v523_v5 }
  0x11   :  { %412 = vmatpush3.msk.msra.mxu0 %vm85_vm5, %v489_v18  ;;  %vm78_vm3 = vcmp.eq.s32.totalorder %v41_v31, %v531_v14  ;;  %vm93_vm4 = vcmp.eq.s32.totalorder %v56_v32, %v531_v14  ;;  %v54_v36 = vadd.s32 152, %v523_v5  ;;  %v38_v37 = vadd.s32 24, %v523_v5 }
  0x12   :  { %413 = vmatprep.subr.msk.mxu0 %vm100_vm6, %v489_v18  ;;  %vm77_vm5 = vcmp.eq.s32.totalorder %v40_v33, %v531_v14  ;;  %vm92_vm6 = vcmp.eq.s32.totalorder %v55_v34, %v531_v14  ;;  %v53_v38 = vadd.s32 144, %v523_v5  ;;  %v37_v39 = vadd.s32 16, %v523_v5 }
  0x13   :  { %414 = vmatpush3.msk.msra.mxu0 %vm84_vm7, %v489_v18  ;;  %vm76_vm7 = vcmp.eq.s32.totalorder %v39_v35, %v531_v14  ;;  %v52_v40 = vadd.s32 136, %v523_v5  ;;  %v36_v41 = vadd.s32 8, %v523_v5  ;;  %v51_v42 = vadd.s32 128, %v523_v5 }
  0x14   :  { %415 = vmatprep.subr.msk.mxu0 %vm99_vm8, %v489_v18  ;;  %vm91_vm8 = vcmp.eq.s32.totalorder %v54_v36, %v531_v14 }
  0x15   :  { %416 = vmatpush3.msk.msra.mxu0 %vm83_vm9, %v489_v18  ;;  %vm75_vm9 = vcmp.eq.s32.totalorder %v38_v37, %v531_v14 }
  0x16   :  { %417 = vmatprep.subr.msk.mxu0 %vm98_vm10, %v489_v18  ;;  %vm90_vm10 = vcmp.eq.s32.totalorder %v53_v38, %v531_v14 }
  0x17   :  { %418 = vmatpush3.msk.msra.mxu0 %vm82_vm11, %v489_v18  ;;  %vm74_vm11 = vcmp.eq.s32.totalorder %v37_v39, %v531_v14 }
  0x18   :  { %419 = vmatprep.subr.msk.mxu0 %vm97_vm12, %v489_v18  ;;  %vm89_vm12 = vcmp.eq.s32.totalorder %v52_v40, %v531_v14 }
  0x19   :  { %420 = vmatpush3.msk.msra.mxu0 %vm81_vm13, %v489_v18  ;;  %vm73_vm13 = vcmp.eq.s32.totalorder %v36_v41, %v531_v14 }
  0x1a   :  { %421 = vmatprep.subr.msk.mxu0 %vm96_vm14, %v489_v18  ;;  %vm88_vm14 = vcmp.eq.s32.totalorder %v51_v42, %v531_v14 }
  0x1b   :  { %422 = vmatpush3.msk.msra.mxu0 %vm80_vm15, %v489_v18  ;;  %vm72_vm15 = vcmp.eq.s32.totalorder %v523_v5, %v531_v14 }
  0x1c   :  { %423 = vmatprep.subr.msk.mxu0 %vm95_vm0, %v489_v18  ;;  %vm20_vm0 = vcmp.lt.s32.totalorder %v521_v4, 127 }
  0x1d   :  { %424 = vmatpush3.msk.msra.mxu0 %vm79_vm1, %v489_v18  ;;  %vm29_vm1 = vcmp.lt.s32.totalorder %v521_v4, 112 }
  0x1e   :  { %425 = vmatprep.subr.msk.mxu0 %vm94_vm2, %v489_v18  ;;  %vm240_vm2 = vcmask 64512  }
  0x1f   :  { %426 = vmatpush3.msk.msra.mxu0 %vm78_vm3, %v489_v18  ;;  %447 = vmatprep.mubr.msk.f32.mxu1 %vm240_vm2, %v238_v58  ;;  %vm322_vm3 = vcmask 523264  }
  0x20   :  { %427 = vmatprep.subr.msk.mxu0 %vm93_vm4, %v489_v18 }
  0x21   :  { %428 = vmatpush3.msk.msra.mxu0 %vm77_vm5, %v489_v18 }
  0x22   :  { %429 = vmatprep.subr.msk.mxu0 %vm92_vm6, %v489_v18 }
  0x23   :  { %430 = vmatpush3.msk.msra.mxu0 %vm76_vm7, %v489_v18 }
  0x24   :  { %431 = vmatprep.subr.msk.mxu0 %vm91_vm8, %v489_v18 }
  0x25   :  { %432 = vmatpush3.msk.msra.mxu0 %vm75_vm9, %v489_v18 }
  0x26   :  { %433 = vmatprep.subr.msk.mxu0 %vm90_vm10, %v489_v18 }
  0x27   :  { %434 = vmatpush3.msk.msra.mxu0 %vm74_vm11, %v489_v18 }
  0x28   :  { %435 = vmatprep.subr.msk.mxu0 %vm89_vm12, %v489_v18 }
  0x29   :  { %436 = vmatpush3.msk.msra.mxu0 %vm73_vm13, %v489_v18 }
  0x2a   :  { %437 = vmatprep.subr.msk.mxu0 %vm88_vm14, %v489_v18 }
  0x2b   :  { %438 = vmatpush3.msk.msra.mxu0 %vm72_vm15, %v489_v18 }
  0x76   :  { %v458_v43 = vpop.permute.xlu0 %457 }
  0x77   :  { %v460_v44 = vunpack.i.h.bf16 %v458_v43  ;;  %v459_v45 = vunpack.i.l.bf16 %v458_v43 }
  0x79   :  { %v21_v46 = vsel %vm20_vm0, %v459_v45, %v460_v44  ;;  %v22_v47 = vsel %vm20_vm0, %v460_v44, %v459_v45 }
  0x7a   :  { %v23_v48 = vmax.f32 %v512_v0, %v21_v46  ;;  %v24_v49 = vmax.f32 %v517_v1, %v22_v47 }
  0x7c   :  { %v461_v50 = vpack.i.bf16 %v24_v49, %v23_v48 }
  0x7e   :  { %462 = vrot.lane.b32.xlu0 %v461_v50, %s490_s0 }
  0xf0   :  { %v463_v51 = vpop.permute.xlu0 %462 }
  0xf1   :  { %v465_v52 = vunpack.i.h.bf16 %v463_v51  ;;  %v464_v53 = vunpack.i.l.bf16 %v463_v51 }
  0xf3   :  { %v31_v54 = vsel %vm29_vm1, %v465_v52, %v464_v53  ;;  %v30_v55 = vsel %vm29_vm1, %v464_v53, %v465_v52 }
  0xf4   :  { %v33_v56 = vmax.f32 %v24_v49, %v31_v54  ;;  %v32_v57 = vmax.f32 %v23_v48, %v30_v55 }
  0xf6   :  { %232 = vmatprep.mubr.f32.mxu0 %v33_v56 }
  0xf7   :  { %233 = vmatmul.mubr.f32.vlgmr.msra.gmra.mxu0 %v32_v57 }
 0x1b7   :  { %v439_v59 = vpop.f32.mrf.mxu0 }
 0x1b9   :  { %v440_v60 = vpop.f32.mrf.mxu0 }
 0x1ba   :  { %v441_v61 = vadd.f32 %v440_v60, %v439_v59 }
 0x1bc   :  { %445 = vmatprep.subr.mxu1 %v441_v61 }
 0x1bd   :  { %446 = vmatpush3.msra.mxu1 %v441_v61 }
 0x1be   :  { %448 = vmatmul.mubr.msk.f32.vlgmr.msra.gmra.mxu1 %vm240_vm2, %v239_v62 }
 0x27e   :  { %v449_v63 = vpop.f32.mrf.mxu1 }
 0x27f   :  { %324 = vst.msk [vmem:[#allocation2 + $0x8] sm:$0xff] %vm322_vm3, %v449_v63 }
 0x280   :  { %v313_v0 = vpop.f32.mrf.mxu1 }
 0x281   :  { %323 = vst.msk [vmem:[#allocation2] sm:$0xff] %vm322_vm3, %v313_v0 }
 0x282   :  { %477 = shalt.err (!%p474_p4)
}
 0x283   :  { %s492_s21 = smov 128   ;;  %s493_s1 = smov 8  }
 0x284   :  { %336 = dma.vmem_to_hbm [thread:$0]  %s331_s19, 256, %s640_s2, [#allocation3], %s492_s21, %s492_s21, %s493_s1  }
 0x285   :  { %486 = dma.done.wait [#allocation3], 256  }
 0x286   :  { %487 = vsyncadd [#allocation3], 4294967040 }
 0x287   :  { %340 = vsyncpa [#allocation3], 1 }

</bundles_post_ra>
